<compile_context>
chip_gen: v5e
topology: v5e:2x2
jax: 0.10.0
libtpu: 0.0.40
codegen_flags: <defaults>
</compile_context>

<pallas_src>
import functools

import jax
import jax.numpy as jnp
from jax import lax
from jax.experimental import pallas as pl
from jax.experimental.pallas import tpu as pltpu


def _label_smoothing_kernel(pred_ref, target_ref, out_ref, *,
                            smoothing, classes, total_n, tile_n, steps_per_part):
    # pred_ref:   (tile_n, C)  input dtype (cast to f32 per tile below)
    # target_ref: (tile_n, 1)  i32
    # out_ref:    (1, 1, 1)    f32 per-partition partial sum (resident over i)
    p = pl.program_id(0)
    i = pl.program_id(1)

    @pl.when(i == 0)
    def _():
        out_ref[...] = jnp.zeros_like(out_ref)

    logits = pred_ref[...].astype(jnp.float32)            # (tile_n, C)
    tgt = target_ref[...]                                  # (tile_n, 1) i32
    tn, c = logits.shape

    # Numerically stable log-softmax pieces (lane reductions on the XLU).
    m = jnp.max(logits, axis=-1, keepdims=True)            # (tile_n, 1)
    shifted = logits - m                                    # (tile_n, C)
    lse = jnp.log(jnp.sum(jnp.exp(shifted), axis=-1, keepdims=True))  # (tile_n, 1)

    off_val = jnp.float32(smoothing / (classes - 1))
    on_val = jnp.float32(1.0 - smoothing)
    class_ids = lax.broadcasted_iota(jnp.int32, (1, c), 1)  # lane-only iota
    w = jnp.where(class_ids == tgt, on_val, off_val)        # (tile_n, C) f32
    # sum(true_dist) == 1  =>  -sum(true_dist * logp) = lse - sum(w * shifted)
    per_row = lse - jnp.sum(w * shifted, axis=-1, keepdims=True)      # (tile_n, 1)

    # Mask rows past the true batch (ragged last tile / clamped padding blocks).
    row_ids = ((p * steps_per_part + i) * tile_n
               + lax.broadcasted_iota(jnp.int32, (tn, 1), 0))
    per_row = jnp.where(row_ids < total_n, per_row, 0.0)

    out_ref[...] += jnp.sum(per_row)


def _vmem_limit_bytes():
    cap = 64 * 1024 * 1024  # conservative fallback (v7x physical VMEM)
    try:
        cap = int(pltpu.get_tpu_info().vmem_capacity_bytes)
    except Exception:
        pass
    # ~75% of physical: ~48 MiB on v7x, ~96 MiB on v5e/v6e.
    return min((cap * 3) // 4, 100 * 1024 * 1024)


def _pick_tile_n(n, c, itemsize, sublane, vmem_limit):
    # Per-row VMEM: 2 double-buffered input copies + ~3 f32 temporaries
    # (cast logits / shifted / exp) + small per-row scalars.
    bytes_per_row = c * (2 * itemsize + 3 * 4) + 32
    budget = (vmem_limit * 3) // 5
    tile = budget // max(bytes_per_row, 1)
    tile = min(tile, 2048)
    n_padded = ((n + sublane - 1) // sublane) * sublane
    tile = min(tile, n_padded)
    tile = max((tile // sublane) * sublane, sublane)
    return int(tile)


def label_smoothing_loss(pred, target, classes, smoothing=0.1,
                         tile_n=None, num_partitions=None):
    """pred: (N, C) float (any float dtype), target: (N,) int -> scalar f32."""
    n, c = pred.shape
    assert c == classes
    assert classes > 1, "smoothing/(classes-1) is undefined for classes == 1"
    target2d = target.astype(jnp.int32).reshape(n, 1)

    itemsize = jnp.dtype(pred.dtype).itemsize
    sublane = max(8, 32 // itemsize)          # 8 for f32, 16 for bf16
    vmem_limit = _vmem_limit_bytes()

    if tile_n is None:
        tile_n = _pick_tile_n(n, c, itemsize, sublane, vmem_limit)
    else:
        tile_n = max(((int(tile_n) + sublane - 1) // sublane) * sublane, sublane)

    steps_total = pl.cdiv(n, tile_n)
    if num_partitions is None:
        num_partitions = 2 if steps_total >= 2 else 1   # 2 TCs on v7x
    num_partitions = max(1, min(int(num_partitions), steps_total))
    spp = pl.cdiv(steps_total, num_partitions)

    def in_row_map(p, i):
        # Clamp so duplicated tail blocks stay in-bounds; their rows are
        # masked out in the kernel via the (unclamped) global row index.
        return (jnp.minimum(p * spp + i, steps_total - 1), 0)

    kernel = functools.partial(
        _label_smoothing_kernel,
        smoothing=float(smoothing), classes=int(classes),
        total_n=int(n), tile_n=int(tile_n), steps_per_part=int(spp),
    )

    out = pl.pallas_call(
        kernel,
        out_shape=jax.ShapeDtypeStruct((num_partitions, 1, 1), jnp.float32),
        grid=(num_partitions, spp),
        in_specs=[
            pl.BlockSpec((tile_n, c), in_row_map),
            pl.BlockSpec((tile_n, 1), in_row_map),
        ],
        out_specs=pl.BlockSpec((1, 1, 1), lambda p, i: (p, 0, 0)),
        compiler_params=pltpu.CompilerParams(
            dimension_semantics=("parallel", "arbitrary"),
            vmem_limit_bytes=int(vmem_limit),
        ),
    )(pred, target2d)
    return jnp.sum(out) / jnp.float32(n)


def _reference(pred, target, classes, smoothing=0.1):
    logp = jax.nn.log_softmax(pred.astype(jnp.float32), axis=-1)
    true_dist = jnp.full_like(logp, smoothing / (classes - 1))
    true_dist = true_dist.at[jnp.arange(pred.shape[0]), target].set(1.0 - smoothing)
    return jnp.mean(jnp.sum(-true_dist * logp, axis=-1))


if __name__ == "__main__":
    key = jax.random.PRNGKey(0)
    k1, k2 = jax.random.split(key)

    batch = 20          # not a multiple of tile_n -> exercises the mask path
    classes = 10
    smoothing = 0.1

    pred = jax.random.normal(k1, (batch, classes), dtype=jnp.float32)
    target = jax.random.randint(k2, (batch,), 0, classes, dtype=jnp.int32)

    ref = jax.block_until_ready(_reference(pred, target, classes, smoothing))

    # Small explicit tile + 2 partitions: multi-step accumulator, clamped
    # duplicate block, and ragged-tail masking all exercised.
    loss_small = label_smoothing_loss(pred, target, classes, smoothing,
                                      tile_n=8, num_partitions=2)
    loss_small = jax.block_until_ready(loss_small)
    assert jnp.allclose(loss_small, ref, atol=1e-5, rtol=1e-5), (loss_small, ref)

    # Default (VMEM-budget-derived) tile path.
    loss_auto = label_smoothing_loss(pred, target, classes, smoothing)
    loss_auto = jax.block_until_ready(loss_auto)
    assert jnp.allclose(loss_auto, ref, atol=1e-5, rtol=1e-5), (loss_auto, ref)

    print("KERNEL_OK")
</pallas_src>

<mosaic_0001>
module attributes {stable_mosaic.version = 11 : i64} {
  func.func @_label_smoothing_kernel(%arg0: i32, %arg1: i32, %arg2: memref<8x10xf32, #tpu.memory_space<vmem>>, %arg3: memref<8x1xi32, #tpu.memory_space<vmem>>, %arg4: memref<1x1x1xf32, #tpu.memory_space<vmem>>) attributes {dimension_semantics = [#tpu.dimension_semantics<parallel>, #tpu.dimension_semantics<arbitrary>], iteration_bounds = array<i64: 2, 2>, scalar_prefetch = 0 : i64, scratch_operands = 0 : i64, tpu.core_type = #tpu.core_type<tc>, window_params = [{transform_indices = @transform_0, window_bounds = array<i64: 8, 10>}, {transform_indices = @transform_1, window_bounds = array<i64: 8, 1>}, {transform_indices = @transform_2, window_bounds = array<i64: 1, 1, 1>}]} {
    %c0_i32 = arith.constant 0 : i32
    %0 = arith.cmpi eq, %arg1, %c0_i32 : i32
    %1 = arith.extui %0 : i1 to i32
    %c0_i32_0 = arith.constant 0 : i32
    %2 = arith.cmpi ne, %1, %c0_i32_0 : i32
    scf.if %2 {
      %cst_16 = arith.constant 0.000000e+00 : f32
      %42 = vector.broadcast %cst_16 : f32 to vector<1x1x1xf32>
      %c0_17 = arith.constant 0 : index
      %c0_18 = arith.constant 0 : index
      %c0_19 = arith.constant 0 : index
      %43 = vector.load %arg4[%c0_17, %c0_18, %c0_19] : memref<1x1x1xf32, #tpu.memory_space<vmem>>, vector<1x1x1xf32>
      tpu.vector_store %arg4[%c0_17, %c0_18, %c0_19], %42 {strides = array<i32>} : memref<1x1x1xf32, #tpu.memory_space<vmem>>, vector<1x1x1xf32>,
    } else {
    }
    %c0 = arith.constant 0 : index
    %c0_1 = arith.constant 0 : index
    %3 = vector.load %arg2[%c0, %c0_1] : memref<8x10xf32, #tpu.memory_space<vmem>>, vector<8x10xf32>
    %c0_2 = arith.constant 0 : index
    %c0_3 = arith.constant 0 : index
    %4 = vector.load %arg3[%c0_2, %c0_3] : memref<8x1xi32, #tpu.memory_space<vmem>>, vector<8x1xi32>
    %cst = arith.constant dense<0xFF800000> : vector<8xf32>
    %5 = vector.multi_reduction <maximumf>, %3, %cst [1] : vector<8x10xf32> to vector<8xf32>
    %6 = vector.shape_cast %5 : vector<8xf32> to vector<8x1xf32>
    %7 = vector.broadcast %6 : vector<8x1xf32> to vector<8x10xf32>
    %8 = arith.subf %3, %7 : vector<8x10xf32>
    %9 = math.exp %8 : vector<8x10xf32>
    %cst_4 = arith.constant dense<0.000000e+00> : vector<8xf32>
    %10 = vector.multi_reduction <add>, %9, %cst_4 [1] : vector<8x10xf32> to vector<8xf32>
    %11 = vector.shape_cast %10 : vector<8xf32> to vector<8x1xf32>
    %12 = math.log %11 : vector<8x1xf32>
    %13 = tpu.iota {dimensions = array<i32: 1>} : vector<1x10xi32>
    %14 = vector.broadcast %13 : vector<1x10xi32> to vector<8x10xi32>
    %15 = vector.broadcast %4 : vector<8x1xi32> to vector<8x10xi32>
    %16 = arith.cmpi eq, %14, %15 : vector<8x10xi32>
    %cst_5 = arith.constant 0.899999976 : f32
    %cst_6 = arith.constant 0.0111111114 : f32
    %17 = vector.broadcast %cst_5 : f32 to vector<8x10xf32>
    %18 = vector.broadcast %cst_6 : f32 to vector<8x10xf32>
    %19 = arith.select %16, %17, %18 : vector<8x10xi1>, vector<8x10xf32>
    %20 = arith.mulf %19, %8 : vector<8x10xf32>
    %cst_7 = arith.constant dense<0.000000e+00> : vector<8xf32>
    %21 = vector.multi_reduction <add>, %20, %cst_7 [1] : vector<8x10xf32> to vector<8xf32>
    %22 = vector.shape_cast %21 : vector<8xf32> to vector<8x1xf32>
    %23 = arith.subf %12, %22 : vector<8x1xf32>
    %c2_i32 = arith.constant 2 : i32
    %24 = arith.muli %arg0, %c2_i32 : i32
    %25 = arith.addi %24, %arg1 : i32
    %c8_i32 = arith.constant 8 : i32
    %26 = arith.muli %25, %c8_i32 : i32
    %27 = tpu.iota {dimensions = array<i32: 0>} : vector<8x1xi32>
    %28 = vector.broadcast %26 : i32 to vector<8x1xi32>
    %29 = arith.addi %28, %27 : vector<8x1xi32>
    %c20_i32 = arith.constant 20 : i32
    %30 = vector.broadcast %c20_i32 : i32 to vector<8x1xi32>
    %31 = arith.cmpi slt, %29, %30 : vector<8x1xi32>
    %cst_8 = arith.constant 0.000000e+00 : f32
    %32 = vector.broadcast %cst_8 : f32 to vector<8x1xf32>
    %33 = arith.select %31, %23, %32 : vector<8x1xi1>, vector<8x1xf32>
    %c0_9 = arith.constant 0 : index
    %c0_10 = arith.constant 0 : index
    %c0_11 = arith.constant 0 : index
    %34 = vector.load %arg4[%c0_9, %c0_10, %c0_11] : memref<1x1x1xf32, #tpu.memory_space<vmem>>, vector<1x1x1xf32>
    %35 = vector.shape_cast %33 : vector<8x1xf32> to vector<1x8x1xf32>
    %cst_12 = arith.constant dense<0.000000e+00> : vector<1xf32>
    %36 = vector.multi_reduction <add>, %35, %cst_12 [1, 2] : vector<1x8x1xf32> to vector<1xf32>
    %37 = vector.shape_cast %36 : vector<1xf32> to vector<1x1x1xf32>
    %38 = vector.extract %37[0, 0, 0] : f32 from vector<1x1x1xf32>
    %39 = vector.broadcast %38 : f32 to vector<1x1x1xf32>
    %40 = arith.addf %34, %39 : vector<1x1x1xf32>
    %c0_13 = arith.constant 0 : index
    %c0_14 = arith.constant 0 : index
    %c0_15 = arith.constant 0 : index
    %41 = vector.load %arg4[%c0_13, %c0_14, %c0_15] : memref<1x1x1xf32, #tpu.memory_space<vmem>>, vector<1x1x1xf32>
    tpu.vector_store %arg4[%c0_13, %c0_14, %c0_15], %40 {strides = array<i32>} : memref<1x1x1xf32, #tpu.memory_space<vmem>>, vector<1x1x1xf32>,
    return
  }
  func.func @transform_0(%arg0: i32, %arg1: i32) -> (i32, i32) {
    %c2_i32 = arith.constant 2 : i32
    %0 = arith.muli %arg0, %c2_i32 : i32
    %1 = arith.addi %0, %arg1 : i32
    %c2_i32_0 = arith.constant 2 : i32
    %2 = arith.minsi %1, %c2_i32_0 : i32
    %c0_i32 = arith.constant 0 : i32
    %c0_i32_1 = arith.constant 0 : i32
    return %2, %c0_i32 : i32, i32
  }
  func.func @transform_1(%arg0: i32, %arg1: i32) -> (i32, i32) {
    %c2_i32 = arith.constant 2 : i32
    %0 = arith.muli %arg0, %c2_i32 : i32
    %1 = arith.addi %0, %arg1 : i32
    %c2_i32_0 = arith.constant 2 : i32
    %2 = arith.minsi %1, %c2_i32_0 : i32
    %c0_i32 = arith.constant 0 : i32
    %c0_i32_1 = arith.constant 0 : i32
    return %2, %c0_i32 : i32, i32
  }
  func.func @transform_2(%arg0: i32, %arg1: i32) -> (i32, i32, i32) {
    %c0_i32 = arith.constant 0 : i32
    %c0_i32_0 = arith.constant 0 : i32
    %c0_i32_1 = arith.constant 0 : i32
    return %arg0, %c0_i32, %c0_i32_0 : i32, i32, i32
  }
}

</mosaic_0001>

<bundles_post_ra>
// kernel: tpu_custom_call.1
= control target key start
LH: loop header
LB: loop body
LE: loop exit
PB: predicated region body
PF: predicated region fallthrough
CT: control target
= control target key end

     0   :  { %s481_s9 = smov 0   ;;  %s483_s10 = smov 0   ;;  %s548_s0 = inlined_call_operand.vmem [shape: f32[20,10], index: 0, kind: input, shape index: {}]   ;;  %s549_s1 = inlined_call_operand.vmem [shape: s32[20,1], index: 1, kind: input, shape index: {}]   ;;  %s550_s2 = inlined_call_operand.vmem [shape: f32[2,1,1], index: 2, kind: output, shape index: {}]  }
   0x1   :  { %s485_s11 = smov 0   ;;  %s487_s12 = smov 0  }
   0x2   :  { %s489_s13 = smov 0  }
   0x3 LB: > { %s21_s14 = sadd.s32 1, %s453_s11  ;;  %s24_s15 = sadd.s32 1, %s457_s12  ;;  %s461_s13 = sphi %s489_s13, %s12_s13   ;;  %s457_s12 = sphi %s487_s12, %s554_s12   ;;  %s453_s11 = sphi %s485_s11, %s553_s11   ;;  %s449_s10 = sphi %s483_s10, %s552_s10   ;;  %s445_s9 = sphi %s481_s9, %s551_s9  }
   0x4   : > { %p22_p0 = scmp.ge.s32.totalorder %s21_s14, 2  ;;  %p357_p1 = scmp.ge.s32.totalorder %s461_s13, 1 }
   0x5   : > { %p164_p2 = scmp.lt.s32.totalorder %s461_s13, 5 }
   0x6   : > { %s556_s14 = smov (%p22_p0, %s21_s14), 0  ;;  %s558_s15 = smov (!%p22_p0, %s24_s15), %s457_s12 }
   0x7   : > { %p165_p3 = pnand %p357_p1, %p164_p2  ;;  %p26_p4 = scmp.ge.s32.totalorder %s558_s15, 2 }
   0x8   : > { %s358_s16 = sshll.u32 (!%p165_p3), %s449_s10, 1  ;;  %p219_p5 = scmp.lt.s32.totalorder (!%p165_p3), %s449_s10, 1 }
   0x9   : > { %s560_s15 = smov (%p26_p4, %s558_s15), 0  ;;  %168 = sbr.rel (%p165_p3) target bundleno = 467 (0x1d3), region = 28 }
   0xa   : > { %s511_s17 = sadd.s32 (!%p165_p3), %s445_s9, %s358_s16  ;;  %p368_p7 = scmp.ne.s32.totalorder (!%p165_p3), %s445_s9, 0 }
   0xb   : > { %p197_p6 = scmp.lt.s32.totalorder (!%p165_p3), %s511_s17, 2 }
   0xe   : > { %s562_s10 = smov (!%p219_p5, %s449_s10), 1 }
   0xf   : > { %s198_s18 = scalar_select %p197_p6, %s511_s17, 2 }
  0x10   : > { %s518_s21 = scalar_lea.vmem %s550_s2, %s562_s10  ;;  %225 = sbr.rel (%p368_p7) target bundleno = 23 (0x17), region = 32 }
  0x11   : > { %s564_s18 = smov (!%p197_p6, %s198_s18), 2 }
  0x12   : > { %s362_s22 = sshll.u32 %s564_s18, 3 }
  0x13   : > { %s202_s25 = scalar_lea.vmem %s548_s0, %s362_s22  ;;  %s214_s28 = scalar_lea.vmem %s549_s1, %s362_s22 }
  0x15   : > { %vm226_vm0 = vcmask 0   ;;  %v463_v0 = vmov 0.0  }
  0x16   : > { %227 = vst.msk [vmem:[%s518_s21] sm:$0x1] %vm226_vm0, %v463_v0 }
  0x17 PF: > { %v228_v1 = vld [vmem:[%s202_s25] sm:$0xff]  ;;  %vm230_vm1 = vcmask 80896   ;;  %v464_v3 = vmov 0   ;;  %v242_v10 = vlaneseq  ;;  %v465_v13 = vmov 0.011111111   ;;  %s370_s29 = sshll.u32 %s511_s17, 3 }
  0x18   : > { %v231_v2 = vsel %vm230_vm1, %v228_v1, -inf  ;;  %418 = vset.pattern.permute.xlu0 %v464_v3  ;;  %v229_v4 = vld [vmem:[%s214_s28] sm:$0xff]  ;;  %v259_v19 = vstv %s370_s29  ;;  %vm264_vm4 = vcmask 7168   ;;  %vm277_vm5 = vcmask 0  }
  0x19   : > { %232 = vmax.xlane.f32.xlu0 %v231_v2  ;;  %v243_v11 = vand.u32 127, %v242_v10  ;;  %v258_v18 = vshrl.u32 %v242_v10, 7 }
  0x1b   : > { %v260_v21 = vadd.s32 %v259_v19, %v258_v18 }
  0x1d   : > { %vm261_vm3 = vcmp.lt.s32.totalorder %v260_v21, 20  ;;  %v263_v34 = vld [vmem:[%s518_s21] sm:$0x1] }
  0x2d   : > { %245 = vperm.xlu0 %418, %v229_v4  }
  0x8c   : > { %v233_v5 = vpop.xlane.xlu0 %232 }
  0x8d   : > { %v234_v6 = vsub.f32 %v228_v1, %v233_v5 }
  0x8f   : > { %v235_v7 = vmul.f32 1.442695, %v234_v6 }
  0x91   : > { %419 = vpow2.f32 %v235_v7 }
  0x97   : > { %v420_v8 = vpop.eup %419 }
  0x98   : > { %v237_v9 = vsel %vm230_vm1, %v420_v8, 0.0 }
  0x99   : > { %238 = vadd.xlane.f32.xlu1 %v237_v9 }
  0x9f   : > { %v246_v12 = vpop.permute.xlu0 %245 }
  0xa0   : > { %vm247_vm2 = vcmp.eq.s32.totalorder %v243_v11, %v246_v12 }
  0xa1   : > { %v248_v14 = vsel %vm247_vm2, 0.9, %v465_v13 }
  0xa2   : > { %v249_v15 = vmul.f32 %v248_v14, %v234_v6 }
  0xa4   : > { %v250_v16 = vsel %vm230_vm1, %v249_v15, 0.0 }
  0xa5   : > { %251 = vadd.xlane.f32.xlu1 %v250_v16 }
 0x10c   : > { %v239_v17 = vpop.xlane.xlu1 %238 }
 0x10d   : > { %421 = vlog2.f32 %v239_v17 }
 0x113   : > { %v422_v20 = vpop.eup %421 }
 0x114   : > { %v241_v22 = vmul.f32 0.6931472, %v422_v20 }
 0x118   : > { %v252_v23 = vpop.xlane.xlu1 %251 }
 0x119   : > { %v253_v24 = vsub.f32 %v241_v22, %v252_v23 }
 0x11b   : > { %v262_v25 = vsel %vm261_vm3, %v253_v24, 0.0 }
 0x11c   : > { %v265_v26 = vsel %vm264_vm4, %v262_v25, 0.0 }
 0x11d   : > { %266 = vadd.xlane.f32.xlu2 %v265_v26 }
 0x190   : > { %v267_v27 = vpop.xlane.xlu2 %266 }
 0x191   : > { %v268_v28 = vrot.slane %v267_v27, 4 }
 0x193   : > { %v269_v29 = vadd.f32 %v268_v28, %v267_v27 }
 0x195   : > { %v270_v30 = vrot.slane %v269_v29, 2 }
 0x197   : > { %v271_v31 = vadd.f32 %v270_v30, %v269_v29 }
 0x199   : > { %v272_v32 = vrot.slane %v271_v31, 1 }
 0x19b   : > { %v273_v33 = vadd.f32 %v272_v32, %v271_v31 }
 0x19d   : > { %373 = vpush %v273_v33 }
 0x1ce   : > { %s374_s30 = spop %373 }
 0x1cf   : > { %v275_v35 = vstv %s374_s30 }
 0x1d0   : > { %v276_v36 = vadd.f32 %v275_v35, %v263_v34 }
 0x1d2   : > { %278 = vst.msk [vmem:[%s518_s21] sm:$0x1] %vm277_vm5, %v276_v36 }
 0x1d3 PF: > { %s12_s13 = sadd.s32 1, %s461_s13   ;;  %s551_s9 = smov %s453_s11 }
 0x1d4   : > { %p9_p8 = scmp.ge.s32.totalorder %s12_s13, 6   ;;  %s552_s10 = smov %s457_s12 }
 0x1d5   : > { %s553_s11 = smov %s556_s14  ;;  %s554_s12 = smov %s560_s15 }
 0x1d6   :  { %11 = sbr.rel (!%p9_p8) target bundleno = 3 (0x3), region = 65 }

</bundles_post_ra>
